<compile_context>
chip_gen: v7x
topology: tpu7x:2x2x1
jax: 0.10.0
libtpu: 0.0.40
codegen_flags: <defaults>
</compile_context>

<pallas_src>
import functools

import jax
import jax.numpy as jnp
from jax.experimental import pallas as pl
from jax.experimental.pallas import tpu as pltpu


def _round_up(x, m):
    return ((x + m - 1) // m) * m


def _shift_left(a, k):
    """out[:, j] = a[:, (j + k) % W].

    Wrapped trailing columns are garbage, but they only ever land in columns
    past the valid output width (which is trimmed at the final store).
    """
    if k == 0:
        return a
    return jnp.concatenate([a[:, k:], a[:, :k]], axis=1)


def _basic_block3_kernel(*refs, couts, compute_dtype, has_halo):
    if has_halo:
        (x_ref, xh_ref, w1_ref, b1_ref, w2_ref, b2_ref, w3_ref, b3_ref,
         o_ref) = refs
    else:
        (x_ref, w1_ref, b1_ref, w2_ref, b2_ref, w3_ref, b3_ref, o_ref) = refs
        xh_ref = None

    bt = x_ref.shape[0]
    w = x_ref.shape[2] + (xh_ref.shape[2] if has_halo else 0)
    out_w = o_ref.shape[2]
    c1, c2, c3 = couts

    # Hoist weight loads and bias broadcasts out of the per-batch loop.
    w1, w2, w3 = w1_ref[...], w2_ref[...], w3_ref[...]
    b1 = jnp.broadcast_to(b1_ref[...], (c1, w))
    b2 = jnp.broadcast_to(b2_ref[...], (c2, w))
    b3 = jnp.broadcast_to(b3_ref[...], (c3, w))

    def layer(h, w_stack, bias, cout):
        # One MXU matmul per layer; the 3 taps are the 3 Cout row groups,
        # combined with two lane shifts + adds.  Accumulate in f32.
        y = jnp.dot(w_stack, h.astype(compute_dtype),
                    preferred_element_type=jnp.float32)       # (3*cout, W) f32
        acc = (y[0:cout]
               + _shift_left(y[cout:2 * cout], 1)
               + _shift_left(y[2 * cout:3 * cout], 2))
        return jnp.maximum(acc + bias, 0.0)                    # f32 bias/ReLU

    def body(bb, carry):
        x = x_ref[bb].astype(compute_dtype)                    # (C0, main_w)
        if has_halo:
            x = jnp.concatenate(
                [x, xh_ref[bb].astype(compute_dtype)], axis=1)  # (C0, main_w+128)
        h = layer(x, w1, b1, c1)
        h = layer(h, w2, b2, c2)
        h = layer(h, w3, b3, c3)
        o_ref[bb] = h[:, :out_w].astype(o_ref.dtype)            # lane-dense store
        return carry

    jax.lax.fori_loop(0, bt, body, 0, unroll=True)


def _pick_batch_block(B, n_l, per_batch_bytes, target_bytes=2 << 20):
    """Largest divisor of B under a per-step byte target that still leaves
    >= 2 parallel grid steps whenever possible (v7x has 2 TensorCores)."""
    best = 1
    for bt in range(1, B + 1):
        if B % bt:
            continue
        if bt > 1 and bt * per_batch_bytes > target_bytes:
            continue
        if (B // bt) * n_l < 2 and B * n_l >= 2:
            continue
        best = bt
    return best


def basic_block3_pallas(x_ncl, conv_params, *, l_tile=512, batch_block=None,
                        compute_dtype=jnp.bfloat16):
    """Fused BasicBlock3 forward.

    x_ncl:       (B, C0, L) activations in PyTorch NCL layout.
    conv_params: list of 3 tuples (w, b) in PyTorch layout,
                 w: (Cout, Cin, 3), b: (Cout,).
    Returns (B, C3, L - 6) in x_ncl.dtype.
    """
    B, C0, L = x_ncl.shape
    L_out = L - 6
    assert L_out >= 1, "sequence too short for three valid k=3 convs"
    assert l_tile % 128 == 0, "l_tile must be a multiple of 128 lanes"

    # ---- host-side weight prep: stack the 3 taps along the M (Cout) axis ----
    # w_stack[k*Cout_pad + co, ci] = w[co, ci, k].  Cout is padded to a
    # multiple of 8 so the in-kernel f32 row-group slices stay sublane-aligned.
    # Input channels are never padded (no extra HBM traffic on x).
    w_stacks, b_cols, couts = [], [], []
    cin, cin_pad = C0, C0
    for w, b in conv_params:
        c_out, c_in, k = w.shape
        assert k == 3 and c_in == cin, (w.shape, cin)
        c_out_pad = _round_up(c_out, 8)
        ws = jnp.zeros((3, c_out_pad, cin_pad), jnp.float32)
        ws = ws.at[:, :c_out, :c_in].set(
            jnp.transpose(w, (2, 0, 1)).astype(jnp.float32))
        w_stacks.append(ws.reshape(3 * c_out_pad, cin_pad).astype(compute_dtype))
        b_cols.append(jnp.zeros((c_out_pad, 1), jnp.float32)
                      .at[:c_out, 0].set(b.astype(jnp.float32)))
        couts.append(c_out_pad)
        cin, cin_pad = c_out, c_out_pad
    C3, C3_pad = conv_params[-1][0].shape[0], couts[-1]

    # ---- L tiling: halo delivered as a second, 128-lane view of the input ---
    HALO = 128                       # smallest lane-aligned halo block (need 6)
    tile_l = L_out > l_tile
    if tile_l:
        n_l = pl.cdiv(L_out, l_tile)
        main_w, out_w = l_tile, l_tile
    else:
        n_l = 1
        main_w, out_w = L, L_out
    halo_w = HALO if tile_l else 0

    itemsize = jnp.dtype(x_ncl.dtype).itemsize
    per_batch_bytes = (C0 * (main_w + halo_w) + C3_pad * out_w) * itemsize
    if batch_block is None:
        batch_block = _pick_batch_block(B, n_l, per_batch_bytes)
    assert B % batch_block == 0, (B, batch_block)
    grid = (B // batch_block, n_l)

    # ---- BlockSpecs ---------------------------------------------------------
    in_specs = [pl.BlockSpec((batch_block, C0, main_w), lambda i, j: (i, 0, j))]
    extra_inputs = []
    if tile_l:
        lt_blocks = l_tile // 128
        n128 = (L + 127) // 128

        def halo_map(i, j):
            # 128-lane block starting at the next L tile; clamped for the last
            # tile (its content only feeds masked-out output columns).
            return (i, 0, jnp.minimum((j + 1) * lt_blocks, n128 - 1))

        in_specs.append(pl.BlockSpec((batch_block, C0, HALO), halo_map))
        extra_inputs.append(x_ncl)

    for ws, bc in zip(w_stacks, b_cols):
        in_specs.append(pl.BlockSpec(ws.shape, lambda i, j: (0, 0)))
        in_specs.append(pl.BlockSpec(bc.shape, lambda i, j: (0, 0)))

    out_specs = pl.BlockSpec((batch_block, C3_pad, out_w),
                             lambda i, j: (i, 0, j))

    # ---- explicit VMEM budget (double-buffered blocks + f32 intermediates) --
    in_block_bytes = batch_block * C0 * (main_w + halo_w) * itemsize
    out_block_bytes = batch_block * C3_pad * out_w * itemsize
    weight_bytes = sum(int(a.size) * a.dtype.itemsize for a in w_stacks + b_cols)
    interm_bytes = 4 * 3 * max(couts) * (main_w + halo_w) * 4
    vmem_limit = (2 * (in_block_bytes + out_block_bytes + weight_bytes)
                  + interm_bytes + (4 << 20))
    vmem_limit = int(min(56 << 20, max(32 << 20, vmem_limit)))

    kernel = functools.partial(_basic_block3_kernel, couts=tuple(couts),
                               compute_dtype=compute_dtype, has_halo=tile_l)
    out = pl.pallas_call(
        kernel,
        out_shape=jax.ShapeDtypeStruct((B, C3_pad, L_out), x_ncl.dtype),
        grid=grid,
        in_specs=in_specs,
        out_specs=out_specs,
        compiler_params=pltpu.CompilerParams(
            dimension_semantics=("parallel", "parallel"),
            vmem_limit_bytes=vmem_limit),
    )(x_ncl, *extra_inputs, w_stacks[0], b_cols[0], w_stacks[1], b_cols[1],
      w_stacks[2], b_cols[2])

    if C3_pad != C3:
        # TODO(synk): for non-8-aligned output channels, consider returning the
        # zero-padded (B, C3_pad, L_out) array and letting the consumer fuse
        # this slice; it costs an extra HBM round trip outside the kernel.
        out = out[:, :C3, :]
    return out


# ----------------------------- reference & test -----------------------------

def _reference_forward(x_ncl, conv_params):
    """Pure-JAX reference with PyTorch Conv1d(valid, stride=1) + ReLU semantics."""
    h = x_ncl
    for w, b in conv_params:  # w: (Cout, Cin, K)
        h = jax.lax.conv_general_dilated(
            h, w, window_strides=(1,), padding="VALID",
            dimension_numbers=("NCH", "OIH", "NCH"))
        h = jnp.maximum(h + b[None, :, None], 0.0)
    return h


def _init_conv_params(key, c_in, c_out, k=3):
    """Deterministic PyTorch-style uniform init: w (Cout, Cin, K), b (Cout,)."""
    kw, kb = jax.random.split(key)
    bound = 1.0 / jnp.sqrt(c_in * k)
    w = jax.random.uniform(kw, (c_out, c_in, k), jnp.float32, -bound, bound)
    b = jax.random.uniform(kb, (c_out,), jnp.float32, -bound, bound)
    return w, b


def _run_case(key, B, C0, L, layer_sizes, **kwargs):
    kx, k1, k2, k3 = jax.random.split(key, 4)
    x = jax.random.normal(kx, (B, C0, L), jnp.float32)  # PyTorch (N, C, L)
    params = []
    c_in = C0
    for kk, c_out in zip((k1, k2, k3), layer_sizes):
        params.append(_init_conv_params(kk, c_in, c_out))
        c_in = c_out
    out = jax.block_until_ready(basic_block3_pallas(x, params, **kwargs))
    ref = _reference_forward(x, params)
    assert out.shape == (B, layer_sizes[2], L - 6), out.shape
    return out, ref


if __name__ == "__main__":
    key = jax.random.PRNGKey(0)
    k_small, k_big = jax.random.split(key)

    # Case 1: BasicBlock3(input_size=4, layer_sizes=[8, 16, 8]) at small shapes
    # (single L tile, batch_block=1 -> 2 parallel grid steps).
    out, ref = _run_case(k_small, 2, 4, 16, [8, 16, 8],
                         compute_dtype=jnp.float32)            # tight f32 check
    err = float(jnp.max(jnp.abs(out - ref)))
    assert jnp.allclose(out, ref, atol=1e-4, rtol=1e-4), err

    out, ref = _run_case(k_small, 2, 4, 16, [8, 16, 8])        # default bf16 MXU feed
    err = float(jnp.max(jnp.abs(out - ref)))
    assert jnp.allclose(out, ref, atol=1e-1, rtol=1e-1), err

    # Case 2: exercises the halo-tiled L path (3 L tiles, clamped halo on the
    # last tile, masked edge output block) and the batched fori_loop (bt > 1).
    out, ref = _run_case(k_big, 4, 4, 300, [8, 16, 8],
                         l_tile=128, compute_dtype=jnp.float32)
    err = float(jnp.max(jnp.abs(out - ref)))
    assert jnp.allclose(out, ref, atol=1e-4, rtol=1e-4), err

    out, ref = _run_case(k_big, 4, 4, 300, [8, 16, 8], l_tile=128)  # bf16 + tiling
    err = float(jnp.max(jnp.abs(out - ref)))
    assert jnp.allclose(out, ref, atol=1e-1, rtol=1e-1), err

    print("KERNEL_OK")
</pallas_src>

<mosaic_0001>
module attributes {stable_mosaic.version = 11 : i64} {
  func.func @_basic_block3_kernel(%arg0: i32, %arg1: i32, %arg2: memref<1x4x16xf32, #tpu.memory_space<vmem>>, %arg3: memref<24x4xf32, #tpu.memory_space<vmem>>, %arg4: memref<8x1xf32, #tpu.memory_space<vmem>>, %arg5: memref<48x8xf32, #tpu.memory_space<vmem>>, %arg6: memref<16x1xf32, #tpu.memory_space<vmem>>, %arg7: memref<24x16xf32, #tpu.memory_space<vmem>>, %arg8: memref<8x1xf32, #tpu.memory_space<vmem>>, %arg9: memref<1x8x10xf32, #tpu.memory_space<vmem>>) attributes {dimension_semantics = [#tpu.dimension_semantics<parallel>, #tpu.dimension_semantics<parallel>], iteration_bounds = array<i64: 2, 1>, scalar_prefetch = 0 : i64, scratch_operands = 0 : i64, tpu.core_type = #tpu.core_type<tc>, window_params = [{transform_indices = @transform_0, window_bounds = array<i64: 1, 4, 16>}, {pipeline_mode = #tpu.pipeline_mode<synchronous>, transform_indices = @transform_1, window_bounds = array<i64: 24, 4>}, {pipeline_mode = #tpu.pipeline_mode<synchronous>, transform_indices = @transform_2, window_bounds = array<i64: 8, 1>}, {pipeline_mode = #tpu.pipeline_mode<synchronous>, transform_indices = @transform_3, window_bounds = array<i64: 48, 8>}, {pipeline_mode = #tpu.pipeline_mode<synchronous>, transform_indices = @transform_4, window_bounds = array<i64: 16, 1>}, {pipeline_mode = #tpu.pipeline_mode<synchronous>, transform_indices = @transform_5, window_bounds = array<i64: 24, 16>}, {pipeline_mode = #tpu.pipeline_mode<synchronous>, transform_indices = @transform_6, window_bounds = array<i64: 8, 1>}, {transform_indices = @transform_7, window_bounds = array<i64: 1, 8, 10>}]} {
    %c0 = arith.constant 0 : index
    %c0_0 = arith.constant 0 : index
    %0 = vector.load %arg3[%c0, %c0_0] : memref<24x4xf32, #tpu.memory_space<vmem>>, vector<24x4xf32>
    %c0_1 = arith.constant 0 : index
    %c0_2 = arith.constant 0 : index
    %1 = vector.load %arg5[%c0_1, %c0_2] : memref<48x8xf32, #tpu.memory_space<vmem>>, vector<48x8xf32>
    %c0_3 = arith.constant 0 : index
    %c0_4 = arith.constant 0 : index
    %2 = vector.load %arg7[%c0_3, %c0_4] : memref<24x16xf32, #tpu.memory_space<vmem>>, vector<24x16xf32>
    %c0_5 = arith.constant 0 : index
    %c0_6 = arith.constant 0 : index
    %3 = vector.load %arg4[%c0_5, %c0_6] : memref<8x1xf32, #tpu.memory_space<vmem>>, vector<8x1xf32>
    %4 = vector.shape_cast %3 : vector<8x1xf32> to vector<8x1xf32>
    %5 = vector.broadcast %4 : vector<8x1xf32> to vector<8x16xf32>
    %c0_7 = arith.constant 0 : index
    %c0_8 = arith.constant 0 : index
    %6 = vector.load %arg6[%c0_7, %c0_8] : memref<16x1xf32, #tpu.memory_space<vmem>>, vector<16x1xf32>
    %7 = vector.shape_cast %6 : vector<16x1xf32> to vector<16x1xf32>
    %8 = vector.broadcast %7 : vector<16x1xf32> to vector<16x16xf32>
    %c0_9 = arith.constant 0 : index
    %c0_10 = arith.constant 0 : index
    %9 = vector.load %arg8[%c0_9, %c0_10] : memref<8x1xf32, #tpu.memory_space<vmem>>, vector<8x1xf32>
    %10 = vector.shape_cast %9 : vector<8x1xf32> to vector<8x1xf32>
    %11 = vector.broadcast %10 : vector<8x1xf32> to vector<8x16xf32>
    %c0_i32 = arith.constant 0 : i32
    %12 = arith.index_cast %c0_i32 : i32 to index
    %c0_11 = arith.constant 0 : index
    %c0_12 = arith.constant 0 : index
    %13 = vector.load %arg2[%12, %c0_11, %c0_12] : memref<1x4x16xf32, #tpu.memory_space<vmem>>, vector<1x4x16xf32>
    %14 = vector.shape_cast %13 : vector<1x4x16xf32> to vector<4x16xf32>
    %cst = arith.constant dense<0.000000e+00> : vector<24x16xf32>
    %15 = tpu.matmul %0, %14, %cst {dimension_numbers = #tpu.dot_dimension_numbers<[1], [0], [0], [1], [0, 0, 1, 1], [], []>} : vector<24x4xf32>, vector<4x16xf32>, vector<24x16xf32> -> vector<24x16xf32>
    %16 = vector.extract_strided_slice %15 {offsets = [0, 0], sizes = [8, 16], strides = [1, 1]} : vector<24x16xf32> to vector<8x16xf32>
    %17 = vector.extract_strided_slice %15 {offsets = [8, 0], sizes = [8, 16], strides = [1, 1]} : vector<24x16xf32> to vector<8x16xf32>
    %18 = vector.extract_strided_slice %17 {offsets = [0, 1], sizes = [8, 15], strides = [1, 1]} : vector<8x16xf32> to vector<8x15xf32>
    %19 = vector.extract_strided_slice %17 {offsets = [0, 0], sizes = [8, 1], strides = [1, 1]} : vector<8x16xf32> to vector<8x1xf32>
    %20 = tpu.concatenate %18, %19 in 1 : vector<8x15xf32>, vector<8x1xf32> -> vector<8x16xf32>
    %21 = arith.addf %16, %20 : vector<8x16xf32>
    %22 = vector.extract_strided_slice %15 {offsets = [16, 0], sizes = [8, 16], strides = [1, 1]} : vector<24x16xf32> to vector<8x16xf32>
    %23 = vector.extract_strided_slice %22 {offsets = [0, 2], sizes = [8, 14], strides = [1, 1]} : vector<8x16xf32> to vector<8x14xf32>
    %24 = vector.extract_strided_slice %22 {offsets = [0, 0], sizes = [8, 2], strides = [1, 1]} : vector<8x16xf32> to vector<8x2xf32>
    %25 = tpu.concatenate %23, %24 in 1 : vector<8x14xf32>, vector<8x2xf32> -> vector<8x16xf32>
    %26 = arith.addf %21, %25 : vector<8x16xf32>
    %27 = arith.addf %26, %5 : vector<8x16xf32>
    %cst_13 = arith.constant 0.000000e+00 : f32
    %28 = vector.broadcast %cst_13 : f32 to vector<8x16xf32>
    %29 = arith.maximumf %27, %28 : vector<8x16xf32>
    %cst_14 = arith.constant dense<0.000000e+00> : vector<48x16xf32>
    %30 = tpu.matmul %1, %29, %cst_14 {dimension_numbers = #tpu.dot_dimension_numbers<[1], [0], [0], [1], [0, 0, 1, 1], [], []>} : vector<48x8xf32>, vector<8x16xf32>, vector<48x16xf32> -> vector<48x16xf32>
    %31 = vector.extract_strided_slice %30 {offsets = [0, 0], sizes = [16, 16], strides = [1, 1]} : vector<48x16xf32> to vector<16x16xf32>
    %32 = vector.extract_strided_slice %30 {offsets = [16, 0], sizes = [16, 16], strides = [1, 1]} : vector<48x16xf32> to vector<16x16xf32>
    %33 = vector.extract_strided_slice %32 {offsets = [0, 1], sizes = [16, 15], strides = [1, 1]} : vector<16x16xf32> to vector<16x15xf32>
    %34 = vector.extract_strided_slice %32 {offsets = [0, 0], sizes = [16, 1], strides = [1, 1]} : vector<16x16xf32> to vector<16x1xf32>
    %35 = tpu.concatenate %33, %34 in 1 : vector<16x15xf32>, vector<16x1xf32> -> vector<16x16xf32>
    %36 = arith.addf %31, %35 : vector<16x16xf32>
    %37 = vector.extract_strided_slice %30 {offsets = [32, 0], sizes = [16, 16], strides = [1, 1]} : vector<48x16xf32> to vector<16x16xf32>
    %38 = vector.extract_strided_slice %37 {offsets = [0, 2], sizes = [16, 14], strides = [1, 1]} : vector<16x16xf32> to vector<16x14xf32>
    %39 = vector.extract_strided_slice %37 {offsets = [0, 0], sizes = [16, 2], strides = [1, 1]} : vector<16x16xf32> to vector<16x2xf32>
    %40 = tpu.concatenate %38, %39 in 1 : vector<16x14xf32>, vector<16x2xf32> -> vector<16x16xf32>
    %41 = arith.addf %36, %40 : vector<16x16xf32>
    %42 = arith.addf %41, %8 : vector<16x16xf32>
    %cst_15 = arith.constant 0.000000e+00 : f32
    %43 = vector.broadcast %cst_15 : f32 to vector<16x16xf32>
    %44 = arith.maximumf %42, %43 : vector<16x16xf32>
    %cst_16 = arith.constant dense<0.000000e+00> : vector<24x16xf32>
    %45 = tpu.matmul %2, %44, %cst_16 {dimension_numbers = #tpu.dot_dimension_numbers<[1], [0], [0], [1], [0, 0, 1, 1], [], []>} : vector<24x16xf32>, vector<16x16xf32>, vector<24x16xf32> -> vector<24x16xf32>
    %46 = vector.extract_strided_slice %45 {offsets = [0, 0], sizes = [8, 16], strides = [1, 1]} : vector<24x16xf32> to vector<8x16xf32>
    %47 = vector.extract_strided_slice %45 {offsets = [8, 0], sizes = [8, 16], strides = [1, 1]} : vector<24x16xf32> to vector<8x16xf32>
    %48 = vector.extract_strided_slice %47 {offsets = [0, 1], sizes = [8, 15], strides = [1, 1]} : vector<8x16xf32> to vector<8x15xf32>
    %49 = vector.extract_strided_slice %47 {offsets = [0, 0], sizes = [8, 1], strides = [1, 1]} : vector<8x16xf32> to vector<8x1xf32>
    %50 = tpu.concatenate %48, %49 in 1 : vector<8x15xf32>, vector<8x1xf32> -> vector<8x16xf32>
    %51 = arith.addf %46, %50 : vector<8x16xf32>
    %52 = vector.extract_strided_slice %45 {offsets = [16, 0], sizes = [8, 16], strides = [1, 1]} : vector<24x16xf32> to vector<8x16xf32>
    %53 = vector.extract_strided_slice %52 {offsets = [0, 2], sizes = [8, 14], strides = [1, 1]} : vector<8x16xf32> to vector<8x14xf32>
    %54 = vector.extract_strided_slice %52 {offsets = [0, 0], sizes = [8, 2], strides = [1, 1]} : vector<8x16xf32> to vector<8x2xf32>
    %55 = tpu.concatenate %53, %54 in 1 : vector<8x14xf32>, vector<8x2xf32> -> vector<8x16xf32>
    %56 = arith.addf %51, %55 : vector<8x16xf32>
    %57 = arith.addf %56, %11 : vector<8x16xf32>
    %cst_17 = arith.constant 0.000000e+00 : f32
    %58 = vector.broadcast %cst_17 : f32 to vector<8x16xf32>
    %59 = arith.maximumf %57, %58 : vector<8x16xf32>
    %60 = vector.extract_strided_slice %59 {offsets = [0, 0], sizes = [8, 10], strides = [1, 1]} : vector<8x16xf32> to vector<8x10xf32>
    %61 = arith.index_cast %c0_i32 : i32 to index
    %c0_18 = arith.constant 0 : index
    %c0_19 = arith.constant 0 : index
    %62 = vector.load %arg9[%61, %c0_18, %c0_19] : memref<1x8x10xf32, #tpu.memory_space<vmem>>, vector<1x8x10xf32>
    %63 = vector.shape_cast %62 : vector<1x8x10xf32> to vector<8x10xf32>
    %64 = vector.shape_cast %60 : vector<8x10xf32> to vector<1x8x10xf32>
    tpu.vector_store %arg9[%61, %c0_18, %c0_19], %64 {strides = array<i32>} : memref<1x8x10xf32, #tpu.memory_space<vmem>>, vector<1x8x10xf32>,
    %c1_i32 = arith.constant 1 : i32
    return
  }
  func.func @transform_0(%arg0: i32, %arg1: i32) -> (i32, i32, i32) {
    %c0_i32 = arith.constant 0 : i32
    %c0_i32_0 = arith.constant 0 : i32
    return %arg0, %c0_i32, %arg1 : i32, i32, i32
  }
  func.func @transform_1(%arg0: i32, %arg1: i32) -> (i32, i32) {
    %c0_i32 = arith.constant 0 : i32
    %c0_i32_0 = arith.constant 0 : i32
    %c0_i32_1 = arith.constant 0 : i32
    return %c0_i32, %c0_i32_0 : i32, i32
  }
  func.func @transform_2(%arg0: i32, %arg1: i32) -> (i32, i32) {
    %c0_i32 = arith.constant 0 : i32
    %c0_i32_0 = arith.constant 0 : i32
    %c0_i32_1 = arith.constant 0 : i32
    return %c0_i32, %c0_i32_0 : i32, i32
  }
  func.func @transform_3(%arg0: i32, %arg1: i32) -> (i32, i32) {
    %c0_i32 = arith.constant 0 : i32
    %c0_i32_0 = arith.constant 0 : i32
    %c0_i32_1 = arith.constant 0 : i32
    return %c0_i32, %c0_i32_0 : i32, i32
  }
  func.func @transform_4(%arg0: i32, %arg1: i32) -> (i32, i32) {
    %c0_i32 = arith.constant 0 : i32
    %c0_i32_0 = arith.constant 0 : i32
    %c0_i32_1 = arith.constant 0 : i32
    return %c0_i32, %c0_i32_0 : i32, i32
  }
  func.func @transform_5(%arg0: i32, %arg1: i32) -> (i32, i32) {
    %c0_i32 = arith.constant 0 : i32
    %c0_i32_0 = arith.constant 0 : i32
    %c0_i32_1 = arith.constant 0 : i32
    return %c0_i32, %c0_i32_0 : i32, i32
  }
  func.func @transform_6(%arg0: i32, %arg1: i32) -> (i32, i32) {
    %c0_i32 = arith.constant 0 : i32
    %c0_i32_0 = arith.constant 0 : i32
    %c0_i32_1 = arith.constant 0 : i32
    return %c0_i32, %c0_i32_0 : i32, i32
  }
  func.func @transform_7(%arg0: i32, %arg1: i32) -> (i32, i32, i32) {
    %c0_i32 = arith.constant 0 : i32
    %c0_i32_0 = arith.constant 0 : i32
    return %arg0, %c0_i32, %arg1 : i32, i32, i32
  }
}

</mosaic_0001>

<bundles_post_ra>
// kernel: tpu_custom_call.1
= control target key start
LH: loop header
LB: loop body
LE: loop exit
PB: predicated region body
PF: predicated region fallthrough
CT: control target
= control target key end

     0   :  { %12 = vsyncpa [#allocation3], 0  ;;  %s1282_s0 = inlined_call_operand.vmem [shape: f32[2,4,16], index: 0, kind: input, shape index: {}]   ;;  %s1283_s1 = inlined_call_operand.vmem [shape: f32[24,4], index: 1, kind: input, shape index: {}]   ;;  %s1284_s2 = inlined_call_operand.vmem [shape: f32[8,1], index: 2, kind: input, shape index: {}]   ;;  %s1285_s3 = inlined_call_operand.vmem [shape: f32[48,8], index: 3, kind: input, shape index: {}]   ;;  %s1286_s4 = inlined_call_operand.vmem [shape: f32[16,1], index: 4, kind: input, shape index: {}]   ;;  %s1287_s5 = inlined_call_operand.vmem [shape: f32[24,16], index: 5, kind: input, shape index: {}]   ;;  %s1288_s6 = inlined_call_operand.vmem [shape: f32[8,1], index: 6, kind: input, shape index: {}]   ;;  %s1289_s7 = inlined_call_operand.hbm [shape: f32[2,8,10], index: 7, kind: output, shape index: {}]  }
   0x1   :  { %14 = vsyncpa [#allocation3 + $0x1], 0  ;;  %s1078_s24 = smov 0   ;;  %s1080_s25 = smov 0  }
   0x2   :  { %s1082_s26 = smov 0   ;;  %s1084_s27 = smov 0  }
   0x3   :  { %s1086_s28 = smov 0   ;;  %s1088_s29 = smov 0  }
   0x4 LB: > { %s804_s30 = sadd.s32 4294967295, %s1027_s29   ;;  %s805_s8 = sadd.s32 4294967294, %s1027_s29   ;;  %s1027_s29 = sphi %s1088_s29, %s20_s29   ;;  %s1023_s28 = sphi %s1086_s28, %s1296_s28   ;;  %s1019_s27 = sphi %s1084_s27, %s1295_s27   ;;  %s1015_s26 = sphi %s1082_s26, %s1294_s26   ;;  %s1011_s25 = sphi %s1080_s25, %s1293_s25   ;;  %s1007_s24 = sphi %s1078_s24, %s1292_s24  }
   0x5   : > { %s32_s9 = sadd.s32 1, %s1023_s28  ;;  %s195_s10 = sadd.s32 1, %s1015_s26 }
   0x6   : > { %p34_p0 = scmp.ge.s32.totalorder %s32_s9, 2  ;;  %p205_p1 = scmp.ne.s32.totalorder %s1015_s26, %s1011_s25 }
   0x7   : > { %p206_p2 = scmp.eq.s32.totalorder %s804_s30, 1  ;;  %p211_p3 = scmp.ne.s32.totalorder %s1011_s25, %s1007_s24 }
   0x8   : > { %s1298_s9 = smov (%p34_p0, %s32_s9), 0  ;;  %p212_p5 = scmp.eq.s32.totalorder %s805_s8, 1 }
   0x9   : > { %p1118_p4 = por %p206_p2, %p205_p1  ;;  %s190_s12 = ssub.s32 %s1023_s28, %s1298_s9 }
   0xa   : > { %p808_p6 = scmp.ge.s32.totalorder %s1027_s29, 1  ;;  %p193_p7 = scmp.eq.s32.totalorder %s190_s12, 0 }
   0xb   : > { %p1125_p8 = por %p212_p5, %p211_p3  ;;  %p258_p9 = scmp.lt.s32.totalorder %s1027_s29, 3 }
   0xc   : > { %s1131_s14 = scalar_select %p193_p7, %s1015_s26, %s195_s10  }
   0xd   : > { %p259_p10 = pnand %p808_p6, %p258_p9 }
   0xe   : > { %p292_p11 = scmp.lt.s32.totalorder (!%p259_p10), %s1019_s27, 1  ;;  %v1029_v0 = vmov (!%p259_p10), 0.0   ;;  %vm1030_vm0 = vmmov (!%p259_p10), 0   ;;  %v311_v1 = vld [vmem:[%s1284_s2] sm:$0xff] (!%p259_p10)  ;;  %v1031_v2 = vmov (!%p259_p10), 0   ;;  %vm346_vm1 = vcmask (!%p259_p10), 1043456  }
   0xf   : > { %262 = sbr.rel (%p259_p10) target bundleno = 1080 (0x438), region = 48  ;;  %882 = vmatprep.subr.mxu1 (!%p259_p10), %v1029_v0  ;;  %849 = vmatprep.mubr.msk.f32.mxu1 (!%p259_p10), %vm1030_vm0, %v1029_v0  ;;  %v300_v3 = vld [vmem:[%s1283_s1 + $0x8] sm:$0xff] (!%p259_p10)  ;;  %vm336_vm2 = vcmask (!%p259_p10), 31744   ;;  %v299_v4 = vld [vmem:[%s1283_s1] sm:$0xff] (!%p259_p10)  ;;  %v301_v6 = vld [vmem:[%s1283_s1 + $0x10] sm:$0xff] (!%p259_p10)  ;;  %vm452_vm3 = vcmask (!%p259_p10), 64512  }
  0x10   : > { %844 = vmatprep.subr.mxu0 (!%p259_p10), %v1029_v0  ;;  %846 = vmatprep.mubr.msk.f32.mxu0 (!%p259_p10), %vm1030_vm0, %v1029_v0  ;;  %v302_v7 = vld [vmem:[%s1285_s3] sm:$0xff] (!%p259_p10)  ;;  %s1034_s19 = smov (!%p259_p10), 14   ;;  %s1035_s20 = smov (!%p259_p10), 126   ;;  %v318_v14 = vld [vmem:[%s1286_s4 + $0x8] sm:$0xff] (!%p259_p10)  ;;  %vm437_vm4 = vcmask (!%p259_p10), 121856   ;;  %vm447_vm5 = vcmask (!%p259_p10), 113664  }
  0x11   : > { %947 = vset.pattern.permute.xlu0 (!%p259_p10), %v1031_v2  ;;  %948 = vset.pattern.permute.xlu1 (!%p259_p10), %v1031_v2  ;;  %v317_v15 = vld [vmem:[%s1286_s4] sm:$0xff] (!%p259_p10)  ;;  %v303_v27 = vld [vmem:[%s1285_s3 + $0x8] sm:$0xff] (!%p259_p10)  ;;  %v304_v28 = vld [vmem:[%s1285_s3 + $0x10] sm:$0xff] (!%p259_p10)  ;;  %v1036_v38 = vmov (!%p259_p10), 0.0|0.0   ;;  %vm606_vm6 = vcmask (!%p259_p10), 130048   ;;  %s289_s8 = sand.u32 (!%p259_p10), 1, %s1011_s25  }
  0x12   : > { %314 = vperm.xlu0 (!%p259_p10), %947, %v311_v1   ;;  %v305_v29 = vld [vmem:[%s1285_s3 + $0x18] sm:$0xff] (!%p259_p10)  ;;  %v306_v30 = vld [vmem:[%s1285_s3 + $0x20] sm:$0xff] (!%p259_p10)  ;;  %v307_v31 = vld [vmem:[%s1285_s3 + $0x28] sm:$0xff] (!%p259_p10)  ;;  %s809_s10 = sshll.u32 (!%p259_p10), %s289_s8, 3  ;;  %vm716_vm7 = vcmask (!%p259_p10), 80896   ;;  %s719_s16 = scalar_lea.sflag (!%p259_p10), [#allocation3], %s289_s8 }
  0x13   : > { %v329_v39 = vld [vmem:[%s1288_s6] sm:$0xff] (!%p259_p10)  ;;  %v309_v1 = vld [vmem:[%s1287_s5 + $0x8] sm:$0xff] (!%p259_p10)  ;;  %v310_v2 = vld [vmem:[%s1287_s5 + $0x10] sm:$0xff] (!%p259_p10) }
  0x14   : > { %v308_v63 = vld [vmem:[%s1287_s5] sm:$0xff] (!%p259_p10) }
  0x16   : > { %s293_s17 = scalar_select %p292_p11, %s1019_s27, 1 }
  0x18   : > { %s810_s18 = sshll.u32 %s293_s17, 2  ;;  %s1032_s17 = smov 15  }
  0x19   : > { %s298_s21 = scalar_lea.vmem %s1282_s0, %s810_s18  ;;  %s1033_s18 = smov 127  }
  0x1a   : > { %v335_v5 = vld [vmem:[%s298_s21] sm:$0xf] }
  0x1b   : > { %883 = vmatpush3.msk.msra.mxu1 %vm346_vm1, %v335_v5  ;;  %845 = vmatpush3.msk.msra.mxu0 %vm346_vm1, %v335_v5 }
  0x1c   : > { %850 = vmatmul.mubr.msk.f32.vlgmr.msra.gmra.mrb[0].mxu1 %vm336_vm2, %v300_v3  ;;  %847 = vmatmul.mubr.msk.f32.vlgmr.msra.gmra.mrb[0].mxu0 %vm336_vm2, %v299_v4 }
  0x1d   : > { %852 = vmatprep.mubr.msk.f32.mxu1 %vm1030_vm0, %v1029_v0  ;;  %870 = vmatprep.mubr.msk.f32.mxu0 %vm1030_vm0, %v1029_v0 }
  0x1e   : > { %879 = vmatprep.subr.bf16.mxu0 %v1036_v38 }
  0x20   : > { %853 = vmatmul.mubr.msk.f32.gmra.mrb[2].mxu1 %vm336_vm2, %v301_v6 }
  0x21   : > { %857 = vmatprep.mubr.msk.f32.mxu1 %vm452_vm3, %v302_v7 }
  0x91   : > { %v315_v16 = vpop.permute.xlu0 %314 }
  0xef   : > { %v421_v8 = vpop.f32.mrb[0].mxu1  ;;  %v416_v9 = vpop.f32.mrb[0].mxu0 }
  0xf0   : > { %434 = vrot.lane.b32.xlu1 %v421_v8, %s1032_s17  ;;  %431 = vrot.lane.b32.xlu0 %v421_v8, %s1033_s18  ;;  %v851_v10 = vpop.f32.mrb[1].mxu1  ;;  %v848_v11 = vpop.f32.mrb[1].mxu0 }
  0xf3   : > { %v426_v12 = vpop.f32.mrb[2].mxu1 }
  0xf4   : > { %444 = vrot.lane.b32.xlu0 %v426_v12, %s1034_s19  ;;  %441 = vrot.lane.b32.xlu1 %v426_v12, %s1035_s20  ;;  %v854_v13 = vpop.f32.mrb[3].mxu1 }
  0xf8   : > { %326 = vperm.xlu0 %947, %v318_v14   ;;  %321 = vperm.xlu1 %948, %v317_v15  }
 0x162   : > { %v435_v17 = vpop.permute.xlu1 %434  ;;  %v432_v18 = vpop.permute.xlu0 %431 }
 0x163   : > { %v438_v19 = vsel %vm437_vm4, %v432_v18, %v435_v17 }
 0x164   : > { %v439_v20 = vadd.f32 %v438_v19, %v416_v9 }
 0x166   : > { %v445_v21 = vpop.permute.xlu0 %444  ;;  %v442_v22 = vpop.permute.xlu1 %441 }
 0x167   : > { %v448_v23 = vsel %vm447_vm5, %v442_v22, %v445_v21 }
 0x168   : > { %v449_v24 = vadd.f32 %v448_v23, %v439_v20 }
 0x16a   : > { %v450_v25 = vadd.f32 %v449_v24, %v315_v16 }
 0x16c   : > { %v451_v26 = vmax.f32 %v450_v25, 0.0 }
 0x16e   : > { %855 = vmatprep.subr.mxu1 %v451_v26 }
 0x16f   : > { %856 = vmatpush3.msra.mxu1 %v451_v26 }
 0x170   : > { %858 = vmatmul.mubr.msk.f32.vlgmr.msra.gmra.mrb[4].mxu1 %vm452_vm3, %v303_v27 }
 0x171   : > { %860 = vmatprep.mubr.msk.f32.mxu1 %vm452_vm3, %v304_v28 }
 0x174   : > { %861 = vmatmul.mubr.msk.f32.gmra.mrb[6].mxu1 %vm452_vm3, %v305_v29 }
 0x175   : > { %863 = vmatprep.mubr.msk.f32.mxu1 %vm452_vm3, %v306_v30 }
 0x177   : > { %v322_v40 = vpop.permute.xlu1 %321  ;;  %v327_v41 = vpop.permute.xlu0 %326 }
 0x178   : > { %864 = vmatmul.mubr.msk.f32.gmra.mrb[8].mxu1 %vm452_vm3, %v307_v31 }
 0x243   : > { %v859_v32 = vpop.f32.mrb[4].mxu1 }
 0x244   : > { %v537_v33 = vpop.f32.mrb[5].mxu1 }
 0x247   : > { %v862_v34 = vpop.f32.mrb[6].mxu1 }
 0x248   : > { %570 = vrot.lane.b32.xlu0 %v862_v34, %s1033_s18  ;;  %v547_v35 = vpop.f32.mrb[7].mxu1 }
 0x249   : > { %568 = vrot.lane.b32.xlu1 %v547_v35, %s1033_s18 }
 0x24b   : > { %v865_v36 = vpop.f32.mrb[8].mxu1 }
 0x24c   : > { %576 = vrot.lane.b32.xlu0 %v862_v34, %s1032_s17  ;;  %v557_v37 = vpop.f32.mrb[9].mxu1 }
 0x24d   : > { %574 = vrot.lane.b32.xlu1 %v547_v35, %s1032_s17 }
 0x250   : > { %588 = vrot.lane.b32.xlu0 %v865_v36, %s1035_s20 }
 0x251   : > { %586 = vrot.lane.b32.xlu1 %v557_v37, %s1035_s20 }
 0x254   : > { %594 = vrot.lane.b32.xlu0 %v865_v36, %s1034_s19 }
 0x255   : > { %592 = vrot.lane.b32.xlu1 %v557_v37, %s1034_s19 }
 0x259   : > { %332 = vperm.xlu1 %948, %v329_v39  }
 0x2ba   : > { %v571_v42 = vpop.permute.xlu0 %570 }
 0x2bb   : > { %v569_v43 = vpop.permute.xlu1 %568 }
 0x2be   : > { %v577_v44 = vpop.permute.xlu0 %576 }
 0x2bf   : > { %v575_v45 = vpop.permute.xlu1 %574  ;;  %v581_v47 = vsel %vm437_vm4, %v571_v42, %v577_v44 }
 0x2c0   : > { %v580_v49 = vsel %vm437_vm4, %v569_v43, %v575_v45  ;;  %v583_v50 = vadd.f32 %v859_v32, %v581_v47 }
 0x2c1   : > { %v582_v52 = vadd.f32 %v580_v49, %v537_v33 }
 0x2c2   : > { %v589_v46 = vpop.permute.xlu0 %588 }
 0x2c3   : > { %v587_v48 = vpop.permute.xlu1 %586 }
 0x2c6   : > { %v595_v51 = vpop.permute.xlu0 %594 }
 0x2c7   : > { %v599_v53 = vsel %vm447_vm5, %v589_v46, %v595_v51  ;;  %v593_v54 = vpop.permute.xlu1 %592 }
 0x2c8   : > { %v601_v55 = vadd.f32 %v599_v53, %v583_v50  ;;  %v598_v56 = vsel %vm447_vm5, %v587_v48, %v593_v54 }
 0x2c9   : > { %v600_v57 = vadd.f32 %v598_v56, %v582_v52 }
 0x2ca   : > { %v603_v58 = vadd.f32 %v601_v55, %v327_v41 }
 0x2cb   : > { %v602_v59 = vadd.f32 %v600_v57, %v322_v40 }
 0x2cc   : > { %v605_v60 = vmax.f32 %v603_v58, 0.0 }
 0x2cd   : > { %v604_v61 = vmax.f32 %v602_v59, 0.0 }
 0x2cf   : > { %v880_v62 = vpack.c.bf16 %v605_v60, %v604_v61 }
 0x2d1   : > { %881 = vmatpush3.bf16.msra.mxu0 %v880_v62 }
 0x2d4   : > { %871 = vmatmul.mubr.msk.f32.vlgmr.msra.gmra.mrb[2].mxu0 %vm606_vm6, %v308_v63 }
 0x2d5   : > { %873 = vmatprep.mubr.msk.f32.mxu0 %vm1030_vm0, %v1029_v0 }
 0x2d8   : > { %874 = vmatmul.mubr.msk.f32.gmra.mrb[4].mxu0 %vm606_vm6, %v309_v1  ;;  %v333_v8 = vpop.permute.xlu1 %332 }
 0x2d9   : > { %876 = vmatprep.mubr.msk.f32.mxu0 %vm1030_vm0, %v1029_v0 }
 0x2dc   : > { %877 = vmatmul.mubr.msk.f32.gmra.mrb[6].mxu0 %vm606_vm6, %v310_v2 }
 0x3a7   : > { %v682_v3 = vpop.f32.mrb[2].mxu0 }
 0x3a8   : > { %v872_v4 = vpop.f32.mrb[3].mxu0 }
 0x3ab   : > { %v687_v5 = vpop.f32.mrb[4].mxu0 }
 0x3ac   : > { %700 = vrot.lane.b32.xlu1 %v687_v5, %s1032_s17  ;;  %697 = vrot.lane.b32.xlu0 %v687_v5, %s1033_s18  ;;  %v875_v6 = vpop.f32.mrb[5].mxu0  ;;  %s825_s17 = sshll.u32 %s1019_s27, 7  ;;  %s291_s18 = scalar_lea.vmem [#allocation2], %s809_s10 }
 0x3ad   : > { %s1235_s15 = scalar_lea.hbm %s1289_s7, %s825_s17  ;;  %s1037_s27 = smov [#allocation2]  }
 0x3ae   : > { %s953_s22 = sshll.u32 %s1037_s27, 4  ;;  %s954_s22 = int_to_ptr.vmem [resolvable:$false] %s953_s22 }
 0x3af   : > { %v692_v7 = vpop.f32.mrb[6].mxu0  ;;  %s955_s23 = scalar_lea.vmem %s954_s22, 256 }
 0x3b0   : > { %709 = vrot.lane.b32.xlu1 %v692_v7, %s1034_s19  ;;  %706 = vrot.lane.b32.xlu0 %v692_v7, %s1035_s20  ;;  %v878_v0 = vpop.f32.mrb[7].mxu0  ;;  %s733_s19 = sshll.u32 %s291_s18, 4  ;;  %s1237_s19 = int_to_ptr.vmem [resolvable:$true] %s733_s19 }
 0x3b1   : > { %s949_s21 = scalar_lea.vmem %s1237_s19, 128  ;;  %p956_p1 = scmp.lt.s32.totalorder %s1237_s19, %s954_s22 }
 0x3b2   : > { %p950_p12 = scmp.ne.s32.totalorder %s1237_s19, %s949_s21  ;;  %p957_p2 = scmp.lt.s32.totalorder %s955_s23, %s949_s21 }
 0x3b4   : > { %p951_p13 = pnand %p950_p12, %p1118_p4  ;;  %p958_p3 = por %p957_p2, %p956_p1 }
 0x3b6   : > { %p952_p0 = pneg %p951_p13 }
 0x3b8   : > { %p959_p5 = pnand %p958_p3, %p952_p0 }
 0x41e   : > { %v701_v9 = vpop.permute.xlu1 %700  ;;  %v698_v10 = vpop.permute.xlu0 %697 }
 0x41f   : > { %v703_v11 = vsel %vm437_vm4, %v698_v10, %v701_v9 }
 0x420   : > { %v704_v12 = vadd.f32 %v703_v11, %v682_v3 }
 0x422   : > { %v710_v13 = vpop.permute.xlu1 %709  ;;  %v707_v14 = vpop.permute.xlu0 %706 }
 0x423   : > { %v712_v15 = vsel %vm447_vm5, %v707_v14, %v710_v13 }
 0x424   : > { %v713_v16 = vadd.f32 %v712_v15, %v704_v12 }
 0x426   : > { %v714_v17 = vadd.f32 %v713_v16, %v333_v8 }
 0x428   : > { %v715_v18 = vmax.f32 %v714_v17, 0.0 }
 0x42a   : > { %717 = vst.msk [vmem:[%s291_s18] sm:$0xff] %vm716_vm7, %v715_v18 }
 0x42b   : > { %962 = shalt.err (!%p959_p5)
}
 0x42c   : > { %s963_s30 = scalar_lea.hbm %s1235_s15, 128  ;;  %s967_s17 = scalar_lea.hbm %s1289_s7, 256 }
 0x42d   : > { %p964_p6 = scmp.ne.s32.totalorder %s1235_s15, %s963_s30  ;;  %p968_p10 = scmp.lt.u32.totalorder %s1235_s15, %s1289_s7 }
 0x42e   : > { %p969_p11 = scmp.lt.u32.totalorder %s967_s17, %s963_s30  ;;  %p971_p13 = scmp.lt.u32.totalorder %s963_s30, %s1235_s15 }
 0x42f   : > { %p965_p7 = pnand %p964_p6, %p1118_p4 }
 0x430   : > { %p970_p12 = por %p969_p11, %p968_p10 }
 0x431   : > { %p966_p9 = pneg %p965_p7 }
 0x432   : > { %p972_p0 = por %p971_p13, %p970_p12 }
 0x434   : > { %p973_p1 = pnand %p972_p0, %p966_p9 }
 0x436   : > { %976 = shalt.err (!%p973_p1)
}
 0x437   : > { %884 = dma.vmem_to_hbm [thread:$0]  (%p1118_p4), %s1237_s19, 128, %s1235_s15, %s719_s16  }
 0x438 PF: > { %p890_p2 = scmp.ge.s32.totalorder %s1027_s29, 2  ;;  %s745_s12 = sand.u32 1, %s1007_s24  }
 0x439   : > { %s746_s21 = scalar_lea.sflag [#allocation3], %s745_s12 }
 0x43a   : > { %p887_p3 = pnand %p890_p2, %p1125_p8 }
 0x43c   : > { %1002 = dma.done.wait (!%p887_p3), %s746_s21, 128  }
 0x43d   : > { %1004 = vsyncadd (!%p887_p3), %s746_s21, 4294967168  ;;  %s20_s29 = sadd.s32 1, %s1027_s29   ;;  %s1292_s24 = smov %s1011_s25 }
 0x43e   : > { %p17_p5 = scmp.ge.s32.totalorder %s20_s29, 4   ;;  %s1293_s25 = smov %s1015_s26 }
 0x43f   : > { %s1294_s26 = smov %s1131_s14  ;;  %s1295_s27 = smov %s1023_s28 }
 0x440   : > { %s1296_s28 = smov %s1298_s9  ;;  %19 = sbr.rel (!%p17_p5) target bundleno = 4 (0x4), region = 83 }
 0x447   :  { %751 = vsyncpa [#allocation3], 1 }
 0x448   :  { %753 = vsyncpa [#allocation3 + $0x1], 1 }

</bundles_post_ra>
